<compile_context>
chip_gen: v7x
topology: tpu7x:2x2x1
jax: 0.10.0
libtpu: 0.0.40
codegen_flags: <defaults>
</compile_context>

<pallas_src>
import jax
import jax.numpy as jnp
from jax.experimental import pallas as pl
from jax.experimental.pallas import tpu as pltpu

B_SCALE = 1.0  # self.b = 1 in the PyTorch module


def _laplace_inv_kernel(p_ref, o_ref):
    # Load stored dtype, compute in f32 (v5e VPU/EUP are f32-only; negligible on
    # v6e/v7x since the kernel is HBM-bound), store back in stored dtype.
    p = p_ref[...].astype(jnp.float32)
    lo = p < 0.5
    arg = jnp.where(lo, 2.0 * p, 2.0 * (1.0 - p))   # == 1 - 2*|p - 0.5|, no cancellation
    sgn = jnp.where(lo, 1.0, -1.0)                  # == -sign(p - 0.5); p==0.5 -> log(1)=0
    o_ref[...] = (B_SCALE * sgn * jnp.log(arg)).astype(o_ref.dtype)


def _laplace_inv_jnp(p):
    # Plain-jnp fallback for the <128-element ragged tail.
    d = p.astype(jnp.float32) - 0.5
    out = 0.0 - B_SCALE * jnp.sign(d) * jnp.log(1.0 - 2.0 * jnp.abs(d))
    return out.astype(p.dtype)


def _per_buffer_budget_bytes() -> int:
    """Per-buffer VMEM target (2 in-bufs + 2 out-bufs double-buffered -> 4x this)."""
    try:
        kind = jax.devices()[0].device_kind.lower()
    except Exception:
        kind = ""
    # v6e / v7x: fast HBM + 32 MiB scoped-VMEM default -> 4 MiB blocks (16 MiB total).
    for tag in ("v6", "v7", "trillium", "ironwood"):
        if tag in kind:
            return 4 << 20
    # v5e (16 MiB scoped default) and unknown chips: 2 MiB blocks (8 MiB total).
    return 2 << 20


def laplace_inv(p: jax.Array) -> jax.Array:
    orig_shape = p.shape
    dtype = p.dtype
    flat = p.reshape(-1)
    n = flat.shape[0]

    # Split off the <128-element ragged tail; handled with plain jnp in the wrapper so
    # no full-array jnp.pad / [:n] slice (each a full HBM pass) is ever needed.
    n_tail = n % 128
    n_main = n - n_tail
    tail_out = _laplace_inv_jnp(flat[n_main:]) if n_tail else None
    if n_main == 0:
        return tail_out.reshape(orig_shape)

    # Widest lane count in {512, 256, 128} dividing the main length (lane-dense stores).
    lanes = next(c for c in (512, 256, 128) if n_main % c == 0)
    rows = n_main // lanes
    x2d = flat[:n_main].reshape(rows, lanes)

    itemsize = jnp.dtype(dtype).itemsize
    sublane = max(8, 32 // itemsize)              # 8 for f32, 16 for bf16, 32 for 8-bit
    budget = _per_buffer_budget_bytes()

    # Byte-based block sizing: biggest sublane-aligned row-block under the budget.
    target_rows = max(sublane, (budget // (lanes * itemsize)) // sublane * sublane)
    num_blocks = pl.cdiv(rows, target_rows)
    # Keep >= 2 grid steps for inputs worth splitting (v7x megacore + pipelining).
    if num_blocks < 2 and rows * lanes * itemsize >= (1 << 20) and rows >= 2 * sublane:
        num_blocks = 2
    if num_blocks <= 1:
        block_rows = rows                          # single full-extent block
    else:
        # Balance blocks so the final grid step isn't a nearly-all-OOB tile.
        block_rows = pl.cdiv(pl.cdiv(rows, num_blocks), sublane) * sublane
    grid = (pl.cdiv(rows, block_rows),)

    cost = pl.CostEstimate(
        flops=5 * n_main,
        transcendentals=n_main,
        bytes_accessed=2 * n_main * itemsize,
    )

    out2d = pl.pallas_call(
        _laplace_inv_kernel,
        out_shape=jax.ShapeDtypeStruct((rows, lanes), dtype),
        grid_spec=pltpu.PrefetchScalarGridSpec(
            num_scalar_prefetch=0,
            grid=grid,
            in_specs=[pl.BlockSpec((block_rows, lanes), lambda i: (i, 0))],
            out_specs=pl.BlockSpec((block_rows, lanes), lambda i: (i, 0)),
        ),
        compiler_params=pltpu.CompilerParams(
            dimension_semantics=("parallel",)),
        cost_estimate=cost,
        # NOTE: input_output_aliases={0: 0} would halve peak HBM footprint but only
        # helps when the caller donates `p`; omitted to avoid a defensive copy.
    )(x2d)

    out_flat = out2d.reshape(-1)
    if tail_out is not None:
        out_flat = jnp.concatenate([out_flat, tail_out])
    return out_flat.reshape(orig_shape)


def _reference(p):
    d = p - 0.5
    return 0.0 - B_SCALE * jnp.sign(d) * jnp.log(1.0 - 2.0 * jnp.abs(d))


if __name__ == "__main__":
    key = jax.random.PRNGKey(0)
    k1, k2 = jax.random.split(key)

    # Primary check: NCHW-like shape, 128-divisible path (probabilities in (eps, 1-eps)).
    x = jax.random.uniform(k1, (2, 4, 16, 16), dtype=jnp.float32,
                           minval=0.01, maxval=0.99)
    out = jax.block_until_ready(laplace_inv(x))
    ref = _reference(x)
    assert out.shape == x.shape and out.dtype == x.dtype
    assert jnp.allclose(out, ref, atol=1e-5, rtol=1e-5), "mismatch vs reference (main path)"

    # Secondary check: non-128-divisible size exercises the prefix + jnp-tail path.
    y = jax.random.uniform(k2, (2, 3, 67), dtype=jnp.float32,
                           minval=0.01, maxval=0.99)
    out_y = jax.block_until_ready(laplace_inv(y))
    ref_y = _reference(y)
    assert out_y.shape == y.shape and out_y.dtype == y.dtype
    assert jnp.allclose(out_y, ref_y, atol=1e-5, rtol=1e-5), "mismatch vs reference (tail path)"

    print("KERNEL_OK")
</pallas_src>

<mosaic_0001>
module attributes {stable_mosaic.version = 11 : i64} {
  func.func @_laplace_inv_kernel(%arg0: i32, %arg1: memref<4x512xf32, #tpu.memory_space<vmem>>, %arg2: memref<4x512xf32, #tpu.memory_space<vmem>>) attributes {dimension_semantics = [#tpu.dimension_semantics<parallel>], iteration_bounds = array<i64: 1>, scalar_prefetch = 0 : i64, scratch_operands = 0 : i64, tpu.core_type = #tpu.core_type<tc>, window_params = [{transform_indices = @transform_0, window_bounds = array<i64: 4, 512>}, {transform_indices = @transform_1, window_bounds = array<i64: 4, 512>}]} {
    %c0 = arith.constant 0 : index
    %c0_0 = arith.constant 0 : index
    %0 = vector.load %arg1[%c0, %c0_0] : memref<4x512xf32, #tpu.memory_space<vmem>>, vector<4x512xf32>
    %cst = arith.constant 5.000000e-01 : f32
    %1 = vector.broadcast %cst : f32 to vector<4x512xf32>
    %2 = arith.cmpf olt, %0, %1 : vector<4x512xf32>
    %cst_1 = arith.constant 2.000000e+00 : f32
    %3 = vector.broadcast %cst_1 : f32 to vector<4x512xf32>
    %4 = arith.mulf %3, %0 : vector<4x512xf32>
    %cst_2 = arith.constant 1.000000e+00 : f32
    %5 = vector.broadcast %cst_2 : f32 to vector<4x512xf32>
    %6 = arith.subf %5, %0 : vector<4x512xf32>
    %cst_3 = arith.constant 2.000000e+00 : f32
    %7 = vector.broadcast %cst_3 : f32 to vector<4x512xf32>
    %8 = arith.mulf %7, %6 : vector<4x512xf32>
    %9 = arith.select %2, %4, %8 : vector<4x512xi1>, vector<4x512xf32>
    %cst_4 = arith.constant 1.000000e+00 : f32
    %cst_5 = arith.constant -1.000000e+00 : f32
    %10 = vector.broadcast %cst_4 : f32 to vector<4x512xf32>
    %11 = vector.broadcast %cst_5 : f32 to vector<4x512xf32>
    %12 = arith.select %2, %10, %11 : vector<4x512xi1>, vector<4x512xf32>
    %cst_6 = arith.constant 1.000000e+00 : f32
    %13 = vector.broadcast %cst_6 : f32 to vector<4x512xf32>
    %14 = arith.mulf %13, %12 : vector<4x512xf32>
    %15 = math.log %9 : vector<4x512xf32>
    %16 = arith.mulf %14, %15 : vector<4x512xf32>
    %c0_7 = arith.constant 0 : index
    %c0_8 = arith.constant 0 : index
    %17 = vector.load %arg2[%c0_7, %c0_8] : memref<4x512xf32, #tpu.memory_space<vmem>>, vector<4x512xf32>
    tpu.vector_store %arg2[%c0_7, %c0_8], %16 {strides = array<i32>} : memref<4x512xf32, #tpu.memory_space<vmem>>, vector<4x512xf32>,
    return
  }
  func.func @transform_0(%arg0: i32) -> (i32, i32) {
    %c0_i32 = arith.constant 0 : i32
    %c0_i32_0 = arith.constant 0 : i32
    return %arg0, %c0_i32 : i32, i32
  }
  func.func @transform_1(%arg0: i32) -> (i32, i32) {
    %c0_i32 = arith.constant 0 : i32
    %c0_i32_0 = arith.constant 0 : i32
    return %arg0, %c0_i32 : i32, i32
  }
}

</mosaic_0001>

<bundles_post_ra>
// kernel: tpu_custom_call.1
= control target key start
LH: loop header
LB: loop body
LE: loop exit
PB: predicated region body
PF: predicated region fallthrough
CT: control target
= control target key end

     0   :  { %6 = vsyncpa [#allocation3], 0  ;;  %s150_s0 = inlined_call_operand.hbm [shape: f32[4,512], index: 0, kind: input, shape index: {}]   ;;  %s151_s1 = inlined_call_operand.hbm [shape: f32[4,512], index: 1, kind: output, shape index: {}]  }
   0x1   :  { %7 = vsyncpa [#allocation4], 0  ;;  %s113_s6 = smov [#allocation2]   ;;  %s65_s10 = scalar_lea.hbm %s150_s0, 256 }
   0x2   :  { %s14_s7 = sshll.u32 %s113_s6, 4  ;;  %p66_p0 = scmp.ne.s32.totalorder %s150_s0, %s65_s10  ;;  %s15_s7 = int_to_ptr.vmem [resolvable:$true] %s14_s7 }
   0x3   :  { %p69_p1 = scmp.lt.u32.totalorder %s65_s10, %s150_s0 }
   0x5   :  { %p71_p2 = pnand %p69_p1, %p66_p0 }
   0x7   :  { %74 = shalt.err (!%p71_p2)
}
   0x8   :  { %s75_s15 = scalar_lea.vmem %s15_s7, 256  ;;  %p80_p4 = scmp.lt.s32.totalorder %s15_s7, %s15_s7 }
   0x9   :  { %p76_p3 = scmp.ne.s32.totalorder %s15_s7, %s75_s15  ;;  %p81_p5 = scmp.lt.s32.totalorder %s75_s15, %s75_s15 }
   0xb   :  { %p82_p6 = por %p81_p5, %p80_p4 }
   0xd   :  { %p83_p7 = pnand %p82_p6, %p76_p3 }
   0xf   :  { %86 = shalt.err (!%p83_p7)
}
  0x10   :  { %17 = dma.hbm_to_vmem [thread:$0]  %s150_s0, 256, %s15_s7, [#allocation3]  }
  0x11   :  { %109 = dma.done.wait [#allocation3], 256  }
  0x12   :  { %110 = vsyncadd [#allocation3], 4294967040  ;;  %v21_v0 = vld [vmem:[#allocation2] sm:$0xff]  ;;  %v22_v1 = vld [vmem:[#allocation2 + $0x8] sm:$0xff]  ;;  %v114_v11 = vmov -1.0   ;;  %s115_s0 = smov [#allocation5]  }
  0x13   :  { %v25_v2 = vmul.f32 2.0, %v21_v0  ;;  %v27_v3 = vsub.f32 1.0, %v21_v0  ;;  %vm23_vm0 = vcmp.lt.f32.partialorder %v21_v0, 0.5  ;;  %v26_v4 = vmul.f32 2.0, %v22_v1  ;;  %s49_s18 = sshll.u32 %s115_s0, 4  ;;  %s50_s18 = int_to_ptr.vmem [resolvable:$true] %s49_s18 }
  0x14   :  { %v28_v5 = vsub.f32 1.0, %v22_v1  ;;  %vm24_vm1 = vcmp.lt.f32.partialorder %v22_v1, 0.5  ;;  %v33_v12 = vsel %vm23_vm0, 1.0, %v114_v11  ;;  %s87_s19 = scalar_lea.vmem %s50_s18, 256  ;;  %p92_p9 = scmp.lt.s32.totalorder %s50_s18, %s50_s18 }
  0x15   :  { %v29_v6 = vmul.f32 2.0, %v27_v3  ;;  %v34_v15 = vsel %vm24_vm1, 1.0, %v114_v11  ;;  %p88_p8 = scmp.ne.s32.totalorder %s50_s18, %s87_s19  ;;  %p93_p10 = scmp.lt.s32.totalorder %s87_s19, %s87_s19 }
  0x16   :  { %v30_v7 = vmul.f32 2.0, %v28_v5 }
  0x17   :  { %v31_v8 = vsel %vm23_vm0, %v25_v2, %v29_v6  ;;  %p94_p11 = por %p93_p10, %p92_p9 }
  0x18   :  { %61 = vlog2.f32 %v31_v8  ;;  %v32_v9 = vsel %vm24_vm1, %v26_v4, %v30_v7 }
  0x19   :  { %63 = vlog2.f32 %v32_v9  ;;  %p95_p12 = pnand %p94_p11, %p88_p8 }
  0x22   :  { %v62_v10 = vpop.eup %61 }
  0x23   :  { %v64_v13 = vpop.eup %63  ;;  %v36_v14 = vmul.f32 0.6931472, %v62_v10 }
  0x24   :  { %v38_v16 = vmul.f32 0.6931472, %v64_v13 }
  0x25   :  { %v39_v17 = vmul.f32 %v36_v14, %v33_v12 }
  0x26   :  { %v40_v18 = vmul.f32 %v38_v16, %v34_v15 }
  0x27   :  { %41 = vst [vmem:[#allocation5] sm:$0xff] %v39_v17 }
  0x28   :  { %42 = vst [vmem:[#allocation5 + $0x8] sm:$0xff] %v40_v18 }
  0x29   :  { %98 = shalt.err (!%p95_p12)
}
  0x2a   :  { %s99_s22 = scalar_lea.hbm %s151_s1, 256 }
  0x2b   :  { %p100_p13 = scmp.ne.s32.totalorder %s151_s1, %s99_s22  ;;  %p103_p0 = scmp.lt.u32.totalorder %s99_s22, %s151_s1 }
  0x2d   :  { %p105_p1 = pnand %p103_p0, %p100_p13 }
  0x2f   :  { %108 = shalt.err (!%p105_p1)
}
  0x30   :  { %52 = dma.vmem_to_hbm [thread:$0]  %s50_s18, 256, %s151_s1, [#allocation4]  }
  0x31   :  { %111 = dma.done.wait [#allocation4], 256  }
  0x32   :  { %112 = vsyncadd [#allocation4], 4294967040 }
  0x33   :  { %56 = vsyncpa [#allocation3], 1 }
  0x34   :  { %57 = vsyncpa [#allocation4], 1 }

</bundles_post_ra>
